<compile_context>
chip_gen: v7x
topology: tpu7x:2x2x1
jax: 0.10.0
libtpu: 0.0.40
codegen_flags: <defaults>
</compile_context>

<pallas_src>
import functools

import jax
import jax.numpy as jnp
from jax.experimental import pallas as pl
from jax.experimental.pallas import tpu as pltpu


def _attention_kernel(f1_ref, f2_ref, w1_ref, bw_ref, out_ref, *, n_valid):
    """Processes a block of BB independent attention problems.

    f1_ref : (BB*Np, E)  feature1 rows, Np = neighbor count padded to a multiple of 8
    f2_ref : (BB, E)     feature2, one row per problem (logically repeated Np times)
    w1_ref : (2, E, E)   att1 weight, pre-split & pre-transposed to (in, out):
                         [0] acts on feature1, [1] acts on feature2
    bw_ref : (2, E)      row 0 = att1 bias, row 1 = att2 weight row
    out_ref: (BB, Np, 1) softmax attention weights over the neighbor axis
    """
    bb, n_pad, _ = out_ref.shape
    e = f2_ref.shape[-1]

    f1 = f1_ref[...]                       # (BB*Np, E)
    f2 = f2_ref[...]                       # (BB, E)
    w1a = w1_ref[0]                        # (E, E)  (in, out) half acting on feature1
    w1b = w1_ref[1]                        # (E, E)  (in, out) half acting on feature2
    b1 = bw_ref[0:1, :]                    # (1, E)  att1 bias
    w2r = bw_ref[1:2, :]                   # (1, E)  att2 weight row

    # cat([f1, repeat(f2)], dim=1) @ W1^T  ==  f1 @ W1a^T + f2 @ W1b^T
    # One flat MXU matmul for the dominant feature1 term; the feature2 term is
    # computed once per problem (BB rows) instead of once per neighbor.
    h1 = jnp.dot(f1, w1a, preferred_element_type=jnp.float32)        # (BB*Np, E)
    h2 = jnp.dot(f2, w1b, preferred_element_type=jnp.float32)        # (BB, E)

    # Np is a multiple of 8 (sublane tile), so this split is a free reindexing.
    h = h1.reshape(bb, n_pad, e) + h2[:, None, :] + b1[None, :, :]   # (BB, Np, E)
    h = jnp.maximum(h, 0.0)                # ReLU
    # TODO(synk): F.dropout is identity in eval mode (training=False); a training-mode
    #             variant would use pltpu.prng_seed / pltpu.prng_random_bits.

    # att2 (output width 1): VPU multiply + lane reduction instead of a 1-wide MXU pass.
    # att2's bias is dropped: softmax is shift-invariant, so adding it is a no-op.
    logits = jnp.sum(h * w2r[None, :, :], axis=-1, keepdims=True)    # (BB, Np, 1)

    if n_valid != n_pad:
        # Rows added by neighbor padding get -inf logits -> exactly zero weight.
        row = jax.lax.broadcasted_iota(jnp.int32, (bb, n_pad, 1), 1)
        logits = jnp.where(row < n_valid, logits, -jnp.inf)

    # softmax over the neighbor axis (dim 0 of each problem's (N, 1) logits)
    m = jnp.max(logits, axis=1, keepdims=True)                       # (BB, 1, 1)
    ex = jnp.exp(logits - m)
    s = jnp.sum(ex, axis=1, keepdims=True)                           # (BB, 1, 1)
    out_ref[...] = ex * pl.reciprocal(s, approx=False)


def _pick_block_b(b, requested):
    """Largest legal batch block: whole batch, or a multiple of 8 dividing it."""
    if b % 8 != 0:
        return b                       # single grid step; all blocks equal full dims
    bb = min(requested, b)
    bb = max(8, bb - bb % 8)           # keep the (block_b, E) feature2 block 8-aligned
    while b % bb:
        bb -= 8
    return bb


def attention_forward_batched(feature1, feature2, w1, b1, w2, b2=None, *, block_b=8):
    """Batched forward of the PyTorch `attention` module (eval mode).

    feature1: (B, N, E)   feature2: (B, E)
    w1: (E, 2E)  b1: (E,)  w2: (1, E)  b2: ignored (no-op under softmax)
    returns:  (B, N, 1) attention weights (softmax over the neighbor axis).
    """
    del b2  # softmax shift-invariance: a scalar added to every logit cancels exactly
    b, n, e = feature1.shape
    n_pad = ((n + 7) // 8) * 8
    block_b = _pick_block_b(b, block_b)

    f1 = feature1
    if n_pad != n:
        f1 = jnp.pad(f1, ((0, 0), (0, n_pad - n), (0, 0)))
    f1_flat = f1.reshape(b * n_pad, e)                               # layout plumbing only

    # Pack params once per call: pre-transposed (in, out) halves of W1, and b1/w2 rows.
    w1p = jnp.stack([w1[:, :e].T, w1[:, e:].T], axis=0)              # (2, E, E)
    bw = jnp.stack([b1.reshape(e), w2.reshape(e)], axis=0)           # (2, E)

    kernel = functools.partial(_attention_kernel, n_valid=n)
    out = pl.pallas_call(
        kernel,
        out_shape=jax.ShapeDtypeStruct((b, n_pad, 1), jnp.float32),
        grid=(b // block_b,),
        in_specs=[
            pl.BlockSpec((block_b * n_pad, e), lambda i: (i, 0)),
            pl.BlockSpec((block_b, e), lambda i: (i, 0)),
            pl.BlockSpec((2, e, e), lambda i: (0, 0, 0)),
            pl.BlockSpec((2, e), lambda i: (0, 0)),
        ],
        out_specs=pl.BlockSpec((block_b, n_pad, 1), lambda i: (i, 0, 0)),
        compiler_params=pltpu.CompilerParams(
            dimension_semantics=("parallel",)),
    )(f1_flat, feature2, w1p, bw)

    return out[:, :n, :]


def attention_forward(feature1, feature2, w1, b1, w2, b2=None):
    """Single-problem forward matching the module: feature1 (N, E), feature2 (1, E)."""
    n, e = feature1.shape
    out = attention_forward_batched(feature1[None], feature2.reshape(1, e),
                                    w1, b1, w2, b2, block_b=1)
    return out[0]                                                    # (N, 1)


if __name__ == "__main__":
    embed_dim = 32
    n_neighs = 8
    batch = 16          # number of independent (feature1, feature2) problems per call

    key = jax.random.PRNGKey(0)
    k1, k2, k3, k4, k5, k6 = jax.random.split(key, 6)

    feature1 = jax.random.normal(k1, (batch, n_neighs, embed_dim), dtype=jnp.float32)
    feature2 = jax.random.normal(k2, (batch, embed_dim), dtype=jnp.float32)

    # Deterministic parameter init (PyTorch nn.Linear shapes: weight (out, in), bias (out,)).
    bound1 = 1.0 / jnp.sqrt(2.0 * embed_dim)
    w1 = jax.random.uniform(k3, (embed_dim, 2 * embed_dim), jnp.float32, -bound1, bound1)
    b1 = jax.random.uniform(k4, (embed_dim,), jnp.float32, -bound1, bound1)
    bound2 = 1.0 / jnp.sqrt(float(embed_dim))
    w2 = jax.random.uniform(k5, (1, embed_dim), jnp.float32, -bound2, bound2)
    b2 = jax.random.uniform(k6, (1,), jnp.float32, -bound2, bound2)

    # One pallas_call for the whole batch, parallel grid over batch blocks.
    att = attention_forward_batched(feature1, feature2, w1, b1, w2, b2, block_b=8)
    att = jax.block_until_ready(att)

    # Pure-JAX reference (same math as the PyTorch forward in eval mode, incl. b2).
    f2_rep = jnp.broadcast_to(feature2[:, None, :], (batch, n_neighs, embed_dim))
    x_cat = jnp.concatenate([feature1, f2_rep], axis=-1)                   # (B, N, 2E)
    h_ref = jnp.maximum(jnp.einsum('bnk,ok->bno', x_cat, w1) + b1, 0.0)    # (B, N, E)
    logits_ref = jnp.einsum('bne,oe->bno', h_ref, w2) + b2                 # (B, N, 1)
    att_ref = jax.nn.softmax(logits_ref, axis=1)

    assert att.shape == (batch, n_neighs, 1)
    assert jnp.allclose(att, att_ref, atol=1e-5, rtol=1e-4), "batched mismatch vs reference"

    # Single-problem path (module's original forward signature) reuses the same kernel.
    att_single = attention_forward(feature1[0], feature2[0:1], w1, b1, w2, b2)
    att_single = jax.block_until_ready(att_single)
    assert att_single.shape == (n_neighs, 1)
    assert jnp.allclose(att_single, att_ref[0], atol=1e-5, rtol=1e-4), "single mismatch"

    print("KERNEL_OK")
</pallas_src>

<mosaic_0001>
module attributes {stable_mosaic.version = 11 : i64} {
  func.func @_attention_kernel(%arg0: i32, %arg1: memref<64x32xf32, #tpu.memory_space<vmem>>, %arg2: memref<8x32xf32, #tpu.memory_space<vmem>>, %arg3: memref<2x32x32xf32, #tpu.memory_space<vmem>>, %arg4: memref<2x32xf32, #tpu.memory_space<vmem>>, %arg5: memref<8x8x1xf32, #tpu.memory_space<vmem>>) attributes {dimension_semantics = [#tpu.dimension_semantics<parallel>], iteration_bounds = array<i64: 2>, scalar_prefetch = 0 : i64, scratch_operands = 0 : i64, tpu.core_type = #tpu.core_type<tc>, window_params = [{transform_indices = @transform_0, window_bounds = array<i64: 64, 32>}, {transform_indices = @transform_1, window_bounds = array<i64: 8, 32>}, {pipeline_mode = #tpu.pipeline_mode<synchronous>, transform_indices = @transform_2, window_bounds = array<i64: 2, 32, 32>}, {pipeline_mode = #tpu.pipeline_mode<synchronous>, transform_indices = @transform_3, window_bounds = array<i64: 2, 32>}, {transform_indices = @transform_4, window_bounds = array<i64: 8, 8, 1>}]} {
    %c0 = arith.constant 0 : index
    %c0_0 = arith.constant 0 : index
    %0 = vector.load %arg1[%c0, %c0_0] : memref<64x32xf32, #tpu.memory_space<vmem>>, vector<64x32xf32>
    %c0_1 = arith.constant 0 : index
    %c0_2 = arith.constant 0 : index
    %1 = vector.load %arg2[%c0_1, %c0_2] : memref<8x32xf32, #tpu.memory_space<vmem>>, vector<8x32xf32>
    %c0_3 = arith.constant 0 : index
    %c0_4 = arith.constant 0 : index
    %c0_5 = arith.constant 0 : index
    %2 = vector.load %arg3[%c0_3, %c0_4, %c0_5] : memref<2x32x32xf32, #tpu.memory_space<vmem>>, vector<1x32x32xf32>
    %3 = vector.shape_cast %2 : vector<1x32x32xf32> to vector<32x32xf32>
    %c1 = arith.constant 1 : index
    %c0_6 = arith.constant 0 : index
    %c0_7 = arith.constant 0 : index
    %4 = vector.load %arg3[%c1, %c0_6, %c0_7] : memref<2x32x32xf32, #tpu.memory_space<vmem>>, vector<1x32x32xf32>
    %5 = vector.shape_cast %4 : vector<1x32x32xf32> to vector<32x32xf32>
    %c0_8 = arith.constant 0 : index
    %c0_9 = arith.constant 0 : index
    %6 = vector.load %arg4[%c0_8, %c0_9] : memref<2x32xf32, #tpu.memory_space<vmem>>, vector<1x32xf32>
    %c1_10 = arith.constant 1 : index
    %c0_11 = arith.constant 0 : index
    %7 = vector.load %arg4[%c1_10, %c0_11] : memref<2x32xf32, #tpu.memory_space<vmem>>, vector<1x32xf32>
    %cst = arith.constant dense<0.000000e+00> : vector<64x32xf32>
    %8 = tpu.matmul %0, %3, %cst {dimension_numbers = #tpu.dot_dimension_numbers<[1], [0], [0], [1], [0, 0, 1, 1], [], []>} : vector<64x32xf32>, vector<32x32xf32>, vector<64x32xf32> -> vector<64x32xf32>
    %cst_12 = arith.constant dense<0.000000e+00> : vector<8x32xf32>
    %9 = tpu.matmul %1, %5, %cst_12 {dimension_numbers = #tpu.dot_dimension_numbers<[1], [0], [0], [1], [0, 0, 1, 1], [], []>} : vector<8x32xf32>, vector<32x32xf32>, vector<8x32xf32> -> vector<8x32xf32>
    %10 = vector.shape_cast %8 : vector<64x32xf32> to vector<8x8x32xf32>
    %11 = vector.shape_cast %9 : vector<8x32xf32> to vector<8x1x32xf32>
    %12 = vector.broadcast %11 : vector<8x1x32xf32> to vector<8x8x32xf32>
    %13 = arith.addf %10, %12 : vector<8x8x32xf32>
    %14 = vector.shape_cast %6 : vector<1x32xf32> to vector<1x1x32xf32>
    %15 = vector.broadcast %14 : vector<1x1x32xf32> to vector<8x8x32xf32>
    %16 = arith.addf %13, %15 : vector<8x8x32xf32>
    %cst_13 = arith.constant 0.000000e+00 : f32
    %17 = vector.broadcast %cst_13 : f32 to vector<8x8x32xf32>
    %18 = arith.maximumf %16, %17 : vector<8x8x32xf32>
    %19 = vector.shape_cast %7 : vector<1x32xf32> to vector<1x1x32xf32>
    %20 = vector.broadcast %19 : vector<1x1x32xf32> to vector<8x8x32xf32>
    %21 = arith.mulf %18, %20 : vector<8x8x32xf32>
    %cst_14 = arith.constant dense<0.000000e+00> : vector<8x8xf32>
    %22 = vector.multi_reduction <add>, %21, %cst_14 [2] : vector<8x8x32xf32> to vector<8x8xf32>
    %23 = vector.shape_cast %22 : vector<8x8xf32> to vector<8x8x1xf32>
    %cst_15 = arith.constant dense<0xFF800000> : vector<8x1xf32>
    %24 = vector.multi_reduction <maximumf>, %23, %cst_15 [1] : vector<8x8x1xf32> to vector<8x1xf32>
    %25 = vector.shape_cast %24 : vector<8x1xf32> to vector<8x1x1xf32>
    %26 = vector.broadcast %25 : vector<8x1x1xf32> to vector<8x8x1xf32>
    %27 = arith.subf %23, %26 : vector<8x8x1xf32>
    %28 = math.exp %27 : vector<8x8x1xf32>
    %cst_16 = arith.constant dense<0.000000e+00> : vector<8x1xf32>
    %29 = vector.multi_reduction <add>, %28, %cst_16 [1] : vector<8x8x1xf32> to vector<8x1xf32>
    %30 = vector.shape_cast %29 : vector<8x1xf32> to vector<8x1x1xf32>
    %31 = tpu.reciprocal %30 : vector<8x1x1xf32> -> vector<8x1x1xf32>
    %32 = vector.broadcast %31 : vector<8x1x1xf32> to vector<8x8x1xf32>
    %33 = arith.mulf %28, %32 : vector<8x8x1xf32>
    %c0_17 = arith.constant 0 : index
    %c0_18 = arith.constant 0 : index
    %c0_19 = arith.constant 0 : index
    %34 = vector.load %arg5[%c0_17, %c0_18, %c0_19] : memref<8x8x1xf32, #tpu.memory_space<vmem>>, vector<8x8x1xf32>
    tpu.vector_store %arg5[%c0_17, %c0_18, %c0_19], %33 {strides = array<i32>} : memref<8x8x1xf32, #tpu.memory_space<vmem>>, vector<8x8x1xf32>,
    return
  }
  func.func @transform_0(%arg0: i32) -> (i32, i32) {
    %c0_i32 = arith.constant 0 : i32
    %c0_i32_0 = arith.constant 0 : i32
    return %arg0, %c0_i32 : i32, i32
  }
  func.func @transform_1(%arg0: i32) -> (i32, i32) {
    %c0_i32 = arith.constant 0 : i32
    %c0_i32_0 = arith.constant 0 : i32
    return %arg0, %c0_i32 : i32, i32
  }
  func.func @transform_2(%arg0: i32) -> (i32, i32, i32) {
    %c0_i32 = arith.constant 0 : i32
    %c0_i32_0 = arith.constant 0 : i32
    %c0_i32_1 = arith.constant 0 : i32
    %c0_i32_2 = arith.constant 0 : i32
    return %c0_i32, %c0_i32_0, %c0_i32_1 : i32, i32, i32
  }
  func.func @transform_3(%arg0: i32) -> (i32, i32) {
    %c0_i32 = arith.constant 0 : i32
    %c0_i32_0 = arith.constant 0 : i32
    %c0_i32_1 = arith.constant 0 : i32
    return %c0_i32, %c0_i32_0 : i32, i32
  }
  func.func @transform_4(%arg0: i32) -> (i32, i32, i32) {
    %c0_i32 = arith.constant 0 : i32
    %c0_i32_0 = arith.constant 0 : i32
    %c0_i32_1 = arith.constant 0 : i32
    return %arg0, %c0_i32, %c0_i32_0 : i32, i32, i32
  }
}

</mosaic_0001>

<bundles_post_ra>
// kernel: tpu_custom_call.1
= control target key start
LH: loop header
LB: loop body
LE: loop exit
PB: predicated region body
PF: predicated region fallthrough
CT: control target
= control target key end

     0   :  { %s978_s15 = smov 0   ;;  %s1090_s0 = inlined_call_operand.vmem [shape: f32[128,32], index: 0, kind: input, shape index: {}]   ;;  %s1091_s1 = inlined_call_operand.vmem [shape: f32[16,32], index: 1, kind: input, shape index: {}]   ;;  %s1092_s2 = inlined_call_operand.vmem [shape: f32[2,32,32], index: 2, kind: input, shape index: {}]   ;;  %s1093_s3 = inlined_call_operand.vmem [shape: f32[2,32], index: 3, kind: input, shape index: {}]   ;;  %s1094_s4 = inlined_call_operand.vmem [shape: f32[16,8,1], index: 4, kind: output, shape index: {}]  }
   0x1 LB: > { %s984_s16 = sadd.s32 4294967295, %s947_s15   ;;  %p812_p0 = scmp.ge.s32.totalorder %s947_s15, 1  ;;  %s947_s15 = sphi %s978_s15, %s14_s15  }
   0x2   : > { %p172_p1 = scmp.lt.s32.totalorder %s947_s15, 3 }
   0x4   : > { %p173_p2 = pnand %p812_p0, %p172_p1 }
   0x5   : > { %v227_v0 = vld [vmem:[%s1092_s2] sm:$0xff] (!%p173_p2)  ;;  %v228_v1 = vld [vmem:[%s1092_s2 + $0x8] sm:$0xff] (!%p173_p2)  ;;  %v949_v3 = vmov (!%p173_p2), 0.0|0.0   ;;  %v229_v6 = vld [vmem:[%s1092_s2 + $0x10] sm:$0xff] (!%p173_p2)  ;;  %vm950_vm0 = vmmov (!%p173_p2), 0   ;;  %v951_v8 = vmov (!%p173_p2), 0.0   ;;  %v446_v25 = vlaneseq (!%p173_p2) }
   0x6   : > { %176 = sbr.rel (%p173_p2) target bundleno = 455 (0x1c7), region = 36  ;;  %v818_v2 = vld [vmem:[%s1092_s2 + $0x20] sm:$0xff] (!%p173_p2)  ;;  %891 = vmatprep.subr.bf16.mxu1 (!%p173_p2), %v949_v3  ;;  %v883_v4 = vpack.c.bf16 (!%p173_p2), %v228_v1, %v227_v0  ;;  %v819_v5 = vld [vmem:[%s1092_s2 + $0x28] sm:$0xff] (!%p173_p2)  ;;  %v230_v7 = vld [vmem:[%s1092_s2 + $0x18] sm:$0xff] (!%p173_p2)  ;;  %880 = vmatprep.mubr.msk.f32.mxu1 (!%p173_p2), %vm950_vm0, %v951_v8  ;;  %s813_s29 = sshll.u32 (!%p173_p2), %s984_s16, 3  ;;  %vm238_vm1 = vcmask (!%p173_p2), 261120  }
   0x7   : > { %p208_p3 = scmp.lt.s32.totalorder (!%p173_p2), %s984_s16, 1  ;;  %v892_v9 = vpack.c.bf16 (!%p173_p2), %v819_v5, %v818_v2  ;;  %v887_v10 = vpack.c.bf16 (!%p173_p2), %v230_v7, %v229_v6  ;;  %v820_v11 = vld [vmem:[%s1092_s2 + $0x30] sm:$0xff] (!%p173_p2)  ;;  %v821_v12 = vld [vmem:[%s1092_s2 + $0x38] sm:$0xff] (!%p173_p2)  ;;  %p203_p4 = scmp.lt.s32.totalorder (!%p173_p2), %s813_s29, 15  ;;  %v952_v23 = vmov (!%p173_p2), 1966171168  }
   0x8   : > { %884 = vmatprep.subr.bf16.mxu0 (!%p173_p2), %v883_v4  ;;  %v895_v13 = vpack.c.bf16 (!%p173_p2), %v821_v12, %v820_v11  ;;  %v444_v24 = vunpack.c.l.s4 (!%p173_p2), %v952_v23  ;;  %v447_v27 = vshrl.u32 (!%p173_p2), %v446_v25, 7  ;;  %v831_v45 = vld [vmem:[%s1093_s3] ss:$0 sm:$0xff] (!%p173_p2)  ;;  %v832_v63 = vld [vmem:[%s1093_s3 + $0x1] ss:$0 sm:$0xff] (!%p173_p2)  ;;  %vm731_vm2 = vcmask (!%p173_p2), 7168  }
   0x9   : > { %893 = vmatpush3.bf16.msra.mxu1 (!%p173_p2), %v892_v9  ;;  %886 = vmatpush3.bf16.msra.mxu0 (!%p173_p2), %v883_v4 }
   0xa   : > { %894 = vmatprep.subr.bf16.mxu1 (!%p173_p2), %v949_v3  ;;  %888 = vmatprep.subr.bf16.mxu0 (!%p173_p2), %v887_v10  ;;  %v445_v26 = vunpack.c.0.s8 (!%p173_p2), %v444_v24  ;;  %v493_v33 = vsub.s32 (!%p173_p2), 0, %v447_v27 }
   0xc   : > { %v448_v28 = vsub.s32 (!%p173_p2), %v445_v26, %v447_v27 }
   0xd   : > { %s1096_s16 = smov (!%p208_p3, %s984_s16), 1  ;;  %s1098_s29 = smov (!%p203_p4, %s813_s29), 15  ;;  %896 = vmatpush3.bf16.msra.mxu1 %v895_v13  ;;  %890 = vmatpush3.bf16.msra.mxu0 %v887_v10 }
   0xe   : > { %s815_s8 = sshll.u32 %s1096_s16, 3  ;;  %s814_s9 = sshll.u32 %s1098_s29, 3 }
   0xf   : > { %s211_s12 = scalar_lea.vmem %s1091_s1, %s815_s8  ;;  %s206_s17 = scalar_lea.vmem %s1090_s0, %s814_s9 }
  0x10   : > { %v218_v14 = vld [vmem:[%s206_s17] sm:$0xff]  ;;  %v219_v16 = vld [vmem:[%s206_s17 + $0x8] sm:$0xff]  ;;  %v220_v17 = vld [vmem:[%s206_s17 + $0x10] sm:$0xff]  ;;  %s216_s23 = scalar_lea.vmem %s1094_s4, %s814_s9 }
  0x11   : > { %v226_v15 = vld [vmem:[%s211_s12] sm:$0xff]  ;;  %860 = vmatprep.mubr.msk.f32.mxu0 %vm238_vm1, %v218_v14  ;;  %v221_v18 = vld [vmem:[%s206_s17 + $0x18] sm:$0xff]  ;;  %v223_v20 = vld [vmem:[%s206_s17 + $0x28] sm:$0xff] }
  0x12   : > { %881 = vmatmul.mubr.msk.f32.vlgmr.msra.gmra.mrb[0].mxu1 %vm238_vm1, %v226_v15  ;;  %861 = vmatmul.mubr.msk.f32.vlgmr.msra.gmra.mrb[0].mxu0 %vm238_vm1, %v219_v16  ;;  %v222_v19 = vld [vmem:[%s206_s17 + $0x20] sm:$0xff]  ;;  %v224_v21 = vld [vmem:[%s206_s17 + $0x30] sm:$0xff]  ;;  %v225_v22 = vld [vmem:[%s206_s17 + $0x38] sm:$0xff] }
  0x13   : > { %863 = vmatprep.mubr.msk.f32.mxu0 %vm238_vm1, %v220_v17 }
  0x16   : > { %864 = vmatmul.mubr.msk.f32.gmra.mrb[2].mxu0 %vm238_vm1, %v221_v18 }
  0x17   : > { %866 = vmatprep.mubr.msk.f32.mxu0 %vm238_vm1, %v222_v19 }
  0x1a   : > { %867 = vmatmul.mubr.msk.f32.gmra.mrb[4].mxu0 %vm238_vm1, %v223_v20 }
  0x1b   : > { %869 = vmatprep.mubr.msk.f32.mxu0 %vm238_vm1, %v224_v21 }
  0x1e   : > { %870 = vmatmul.mubr.msk.f32.gmra.mrb[6].mxu0 %vm238_vm1, %v225_v22 }
  0xe5   : > { %v437_v29 = vpop.f32.mrb[0].mxu1  ;;  %v862_v30 = vpop.f32.mrb[0].mxu0 }
  0xe6   : > { %v442_v31 = vcombine.high %v437_v29, %v437_v29  ;;  %v449_v32 = vrot.slane %v437_v29, %v448_v28  ;;  %v882_v34 = vpop.f32.mrb[1].mxu1  ;;  %v329_v35 = vpop.f32.mrb[1].mxu0 }
  0xe8   : > { %v456_v36 = vrot.slane %v442_v31, %v448_v28  ;;  %v457_v37 = vcombine.high %v449_v32, %v449_v32  ;;  %v465_v38 = vrot.slane %v449_v32, %v448_v28 }
  0xe9   : > { %v865_v39 = vpop.f32.mrb[2].mxu0 }
  0xea   : > { %v458_v40 = vcombine.high %v456_v36, %v456_v36  ;;  %v479_v41 = vrot.slane %v457_v37, %v448_v28  ;;  %v494_v42 = vrot.slane %v465_v38, %v493_v33  ;;  %v339_v43 = vpop.f32.mrb[3].mxu0  ;;  %v487_v44 = vcombine.high %v465_v38, %v465_v38 }
  0xeb   : > { %v472_v46 = vrot.slane %v456_v36, %v448_v28 }
  0xec   : > { %v498_v47 = vrot.slane %v479_v41, %v493_v33  ;;  %v531_v48 = vadd.f32 %v494_v42, %v329_v35  ;;  %v489_v49 = vcombine.high %v479_v41, %v479_v41  ;;  %v502_v50 = vrot.slane %v487_v44, %v493_v33 }
  0xed   : > { %v868_v51 = vpop.f32.mrb[4].mxu0  ;;  %v486_v52 = vrot.slane %v458_v40, %v448_v28  ;;  %v510_v53 = vrot.slane %v472_v46, %v493_v33  ;;  %v488_v54 = vcombine.high %v472_v46, %v472_v46 }
  0xee   : > { %v532_v55 = vadd.f32 %v862_v30, %v498_v47  ;;  %v543_v56 = vadd.f32 %v831_v45, %v531_v48  ;;  %v506_v57 = vrot.slane %v489_v49, %v493_v33  ;;  %v533_v58 = vadd.f32 %v502_v50, %v339_v43  ;;  %v349_v59 = vpop.f32.mrb[5].mxu0 }
  0xef   : > { %v514_v60 = vrot.slane %v486_v52, %v493_v33  ;;  %v535_v61 = vadd.f32 %v510_v53, %v349_v59  ;;  %v490_v62 = vcombine.high %v486_v52, %v486_v52  ;;  %v518_v8 = vrot.slane %v488_v54, %v493_v33 }
  0xf0   : > { %v544_v0 = vadd.f32 %v831_v45, %v532_v55  ;;  %v551_v1 = vmax.f32 %v543_v56, 0.0  ;;  %v534_v2 = vadd.f32 %v865_v39, %v506_v57  ;;  %v545_v3 = vadd.f32 %v831_v45, %v533_v58 }
  0xf1   : > { %v536_v4 = vadd.f32 %v868_v51, %v514_v60  ;;  %v547_v5 = vadd.f32 %v831_v45, %v535_v61  ;;  %v871_v6 = vpop.f32.mrb[6].mxu0  ;;  %v522_v7 = vrot.slane %v490_v62, %v493_v33 }
  0xf2   : > { %v552_v9 = vmax.f32 %v544_v0, 0.0  ;;  %v546_v10 = vadd.f32 %v831_v45, %v534_v2  ;;  %v553_v11 = vmax.f32 %v545_v3, 0.0  ;;  %v359_v12 = vpop.f32.mrb[7].mxu0  ;;  %v563_v13 = vmul.f32 %v832_v63, %v551_v1 }
  0xf3   : > { %v548_v14 = vadd.f32 %v831_v45, %v536_v4  ;;  %v555_v15 = vmax.f32 %v547_v5, 0.0  ;;  %v538_v16 = vadd.f32 %v871_v6, %v522_v7  ;;  %v537_v17 = vadd.f32 %v518_v8, %v359_v12 }
  0xf4   : > { %v554_v18 = vmax.f32 %v546_v10, 0.0  ;;  %v571_v19 = vsel %vm238_vm1, %v563_v13, 0.0  ;;  %v565_v20 = vmul.f32 %v832_v63, %v553_v11  ;;  %v564_v21 = vmul.f32 %v832_v63, %v552_v9 }
  0xf5   : > { %v549_v22 = vadd.f32 %v831_v45, %v537_v17  ;;  %572 = vadd.xlane.f32.xlu0 %v571_v19  ;;  %v556_v23 = vmax.f32 %v548_v14, 0.0  ;;  %v550_v24 = vadd.f32 %v831_v45, %v538_v16  ;;  %v567_v29 = vmul.f32 %v832_v63, %v555_v15 }
  0xf6   : > { %v577_v25 = vsel %vm238_vm1, %v565_v20, 0.0  ;;  %v566_v26 = vmul.f32 %v832_v63, %v554_v18  ;;  %v574_v28 = vsel %vm238_vm1, %v564_v21, 0.0 }
  0xf7   : > { %578 = vadd.xlane.f32.xlu1 %v577_v25  ;;  %v557_v27 = vmax.f32 %v549_v22, 0.0  ;;  %v558_v30 = vmax.f32 %v550_v24, 0.0  ;;  %v568_v32 = vmul.f32 %v832_v63, %v556_v23  ;;  %v583_v33 = vsel %vm238_vm1, %v567_v29, 0.0 }
  0xf8   : > { %v580_v31 = vsel %vm238_vm1, %v566_v26, 0.0 }
  0xf9   : > { %575 = vadd.xlane.f32.xlu0 %v574_v28  ;;  %v569_v34 = vmul.f32 %v832_v63, %v557_v27  ;;  %v586_v35 = vsel %vm238_vm1, %v568_v32, 0.0  ;;  %v570_v36 = vmul.f32 %v832_v63, %v558_v30 }
  0xfb   : > { %581 = vadd.xlane.f32.xlu1 %v580_v31  ;;  %v589_v37 = vsel %vm238_vm1, %v569_v34, 0.0  ;;  %v592_v38 = vsel %vm238_vm1, %v570_v36, 0.0 }
  0xfd   : > { %584 = vadd.xlane.f32.xlu0 %v583_v33 }
  0xff   : > { %587 = vadd.xlane.f32.xlu1 %v586_v35 }
 0x101   : > { %590 = vadd.xlane.f32.xlu0 %v589_v37 }
 0x103   : > { %593 = vadd.xlane.f32.xlu1 %v592_v38 }
 0x182   : > { %v573_v39 = vpop.xlane.xlu0 %572 }
 0x183   : > { %v595_v40 = vrot.slane %v573_v39, 4 }
 0x184   : > { %v579_v41 = vpop.xlane.xlu1 %578 }
 0x185   : > { %v596_v42 = vmax.f32 %v573_v39, %v595_v40  ;;  %v607_v43 = vrot.slane %v579_v41, 4 }
 0x186   : > { %v576_v44 = vpop.xlane.xlu0 %575 }
 0x187   : > { %v597_v45 = vrot.slane %v596_v42, 2  ;;  %v608_v46 = vmax.f32 %v579_v41, %v607_v43  ;;  %v601_v47 = vrot.slane %v576_v44, 4 }
 0x188   : > { %v582_v48 = vpop.xlane.xlu1 %581 }
 0x189   : > { %v598_v49 = vmax.f32 %v596_v42, %v597_v45  ;;  %v609_v50 = vrot.slane %v608_v46, 2  ;;  %v602_v51 = vmax.f32 %v576_v44, %v601_v47  ;;  %v613_v52 = vrot.slane %v582_v48, 4 }
 0x18a   : > { %v585_v53 = vpop.xlane.xlu0 %584 }
 0x18b   : > { %v599_v54 = vrot.slane %v598_v49, 1  ;;  %v610_v55 = vmax.f32 %v608_v46, %v609_v50  ;;  %v603_v56 = vrot.slane %v602_v51, 2  ;;  %v614_v57 = vmax.f32 %v582_v48, %v613_v52 }
 0x18c   : > { %v619_v58 = vrot.slane %v585_v53, 4  ;;  %v588_v59 = vpop.xlane.xlu1 %587 }
 0x18d   : > { %v600_v60 = vmax.f32 %v598_v49, %v599_v54  ;;  %v611_v61 = vrot.slane %v610_v55, 1  ;;  %v604_v62 = vmax.f32 %v602_v51, %v603_v56  ;;  %v615_v63 = vrot.slane %v614_v57, 2 }
 0x18e   : > { %v620_v0 = vmax.f32 %v585_v53, %v619_v58  ;;  %v625_v1 = vrot.slane %v588_v59, 4  ;;  %v591_v2 = vpop.xlane.xlu0 %590 }
 0x18f   : > { %v643_v3 = vsub.f32 %v573_v39, %v600_v60  ;;  %v612_v4 = vmax.f32 %v610_v55, %v611_v61  ;;  %v605_v5 = vrot.slane %v604_v62, 1  ;;  %v616_v6 = vmax.f32 %v614_v57, %v615_v63 }
 0x190   : > { %v621_v7 = vrot.slane %v620_v0, 2  ;;  %v626_v8 = vmax.f32 %v588_v59, %v625_v1  ;;  %v631_v9 = vrot.slane %v591_v2, 4  ;;  %v594_v10 = vpop.xlane.xlu1 %593 }
 0x191   : > { %v651_v11 = vmul.f32 1.442695, %v643_v3  ;;  %v645_v12 = vsub.f32 %v579_v41, %v612_v4  ;;  %v606_v13 = vmax.f32 %v604_v62, %v605_v5  ;;  %v617_v14 = vrot.slane %v616_v6, 1 }
 0x192   : > { %v622_v15 = vmax.f32 %v620_v0, %v621_v7  ;;  %v627_v16 = vrot.slane %v626_v8, 2  ;;  %v632_v17 = vmax.f32 %v591_v2, %v631_v9  ;;  %v637_v18 = vrot.slane %v594_v10, 4 }
 0x193   : > { %909 = vpow2.f32 %v651_v11  ;;  %v655_v19 = vmul.f32 1.442695, %v645_v12  ;;  %v644_v20 = vsub.f32 %v576_v44, %v606_v13  ;;  %v618_v21 = vmax.f32 %v616_v6, %v617_v14 }
 0x194   : > { %v623_v22 = vrot.slane %v622_v15, 1  ;;  %v628_v23 = vmax.f32 %v626_v8, %v627_v16  ;;  %v633_v24 = vrot.slane %v632_v17, 2  ;;  %v638_v25 = vmax.f32 %v594_v10, %v637_v18 }
 0x195   : > { %911 = vpow2.f32 %v655_v19  ;;  %v653_v26 = vmul.f32 1.442695, %v644_v20  ;;  %v646_v27 = vsub.f32 %v582_v48, %v618_v21 }
 0x196   : > { %v624_v28 = vmax.f32 %v622_v15, %v623_v22  ;;  %v629_v29 = vrot.slane %v628_v23, 1  ;;  %v634_v30 = vmax.f32 %v632_v17, %v633_v24  ;;  %v639_v31 = vrot.slane %v638_v25, 2 }
 0x197   : > { %913 = vpow2.f32 %v653_v26  ;;  %v657_v32 = vmul.f32 1.442695, %v646_v27 }
 0x198   : > { %v647_v33 = vsub.f32 %v585_v53, %v624_v28  ;;  %v630_v34 = vmax.f32 %v628_v23, %v629_v29  ;;  %v635_v35 = vrot.slane %v634_v30, 1  ;;  %v640_v36 = vmax.f32 %v638_v25, %v639_v31 }
 0x199   : > { %915 = vpow2.f32 %v657_v32 }
 0x19a   : > { %v659_v37 = vmul.f32 1.442695, %v647_v33  ;;  %v648_v38 = vsub.f32 %v588_v59, %v630_v34  ;;  %v636_v39 = vmax.f32 %v634_v30, %v635_v35  ;;  %v641_v40 = vrot.slane %v640_v36, 1 }
 0x19c   : > { %917 = vpow2.f32 %v659_v37  ;;  %v661_v41 = vmul.f32 1.442695, %v648_v38  ;;  %v649_v42 = vsub.f32 %v591_v2, %v636_v39  ;;  %v642_v43 = vmax.f32 %v640_v36, %v641_v40 }
 0x19d   : > { %v1049_v44 = vpop.eup %909 }
 0x19e   : > { %v667_v45 = vrot.slane %v1049_v44, 4  ;;  %919 = vpow2.f32 %v661_v41  ;;  %v663_v46 = vmul.f32 1.442695, %v649_v42  ;;  %v650_v47 = vsub.f32 %v594_v10, %v642_v43 }
 0x19f   : > { %v1052_v48 = vpop.eup %911 }
 0x1a0   : > { %v668_v49 = vadd.f32 %v1049_v44, %v667_v45  ;;  %v679_v50 = vrot.slane %v1052_v48, 4  ;;  %921 = vpow2.f32 %v663_v46  ;;  %v665_v51 = vmul.f32 1.442695, %v650_v47 }
 0x1a1   : > { %v1056_v52 = vpop.eup %913 }
 0x1a2   : > { %v669_v53 = vrot.slane %v668_v49, 2  ;;  %v680_v54 = vadd.f32 %v1052_v48, %v679_v50  ;;  %v673_v55 = vrot.slane %v1056_v52, 4  ;;  %923 = vpow2.f32 %v665_v51 }
 0x1a3   : > { %v1060_v56 = vpop.eup %915 }
 0x1a4   : > { %v670_v57 = vadd.f32 %v669_v53, %v668_v49  ;;  %v681_v58 = vrot.slane %v680_v54, 2  ;;  %v674_v59 = vadd.f32 %v1056_v52, %v673_v55  ;;  %v685_v60 = vrot.slane %v1060_v56, 4 }
 0x1a6   : > { %v1064_v61 = vpop.eup %917  ;;  %v671_v62 = vrot.slane %v670_v57, 1  ;;  %v682_v63 = vadd.f32 %v681_v58, %v680_v54  ;;  %v675_v0 = vrot.slane %v674_v59, 2  ;;  %v686_v1 = vadd.f32 %v1060_v56, %v685_v60 }
 0x1a7   : > { %v691_v2 = vrot.slane %v1064_v61, 4 }
 0x1a8   : > { %v920_v3 = vpop.eup %919  ;;  %v672_v4 = vadd.f32 %v671_v62, %v670_v57  ;;  %v683_v5 = vrot.slane %v682_v63, 1  ;;  %v676_v6 = vadd.f32 %v675_v0, %v674_v59  ;;  %v687_v7 = vrot.slane %v686_v1, 2 }
 0x1a9   : > { %v692_v8 = vadd.f32 %v1064_v61, %v691_v2  ;;  %v697_v9 = vrot.slane %v920_v3, 4 }
 0x1aa   : > { %v922_v10 = vpop.eup %921  ;;  %925 = vrcp.f32 %v672_v4  ;;  %v684_v11 = vadd.f32 %v683_v5, %v682_v63  ;;  %v677_v12 = vrot.slane %v676_v6, 1  ;;  %v688_v13 = vadd.f32 %v687_v7, %v686_v1 }
 0x1ab   : > { %v693_v14 = vrot.slane %v692_v8, 2  ;;  %v698_v15 = vadd.f32 %v920_v3, %v697_v9  ;;  %v703_v16 = vrot.slane %v922_v10, 4 }
 0x1ac   : > { %v924_v17 = vpop.eup %923  ;;  %927 = vrcp.f32 %v684_v11  ;;  %v678_v18 = vadd.f32 %v677_v12, %v676_v6  ;;  %v689_v19 = vrot.slane %v688_v13, 1 }
 0x1ad   : > { %v694_v20 = vadd.f32 %v693_v14, %v692_v8  ;;  %v699_v21 = vrot.slane %v698_v15, 2  ;;  %v704_v22 = vadd.f32 %v922_v10, %v703_v16  ;;  %v709_v23 = vrot.slane %v924_v17, 4 }
 0x1ae   : > { %929 = vrcp.f32 %v678_v18  ;;  %v690_v24 = vadd.f32 %v689_v19, %v688_v13 }
 0x1af   : > { %v695_v25 = vrot.slane %v694_v20, 1  ;;  %v700_v26 = vadd.f32 %v699_v21, %v698_v15  ;;  %v705_v27 = vrot.slane %v704_v22, 2  ;;  %v710_v28 = vadd.f32 %v924_v17, %v709_v23 }
 0x1b0   : > { %931 = vrcp.f32 %v690_v24 }
 0x1b1   : > { %v696_v29 = vadd.f32 %v695_v25, %v694_v20  ;;  %v701_v30 = vrot.slane %v700_v26, 1  ;;  %v706_v31 = vadd.f32 %v705_v27, %v704_v22  ;;  %v711_v32 = vrot.slane %v710_v28, 2 }
 0x1b3   : > { %933 = vrcp.f32 %v696_v29  ;;  %v702_v33 = vadd.f32 %v701_v30, %v700_v26  ;;  %v707_v34 = vrot.slane %v706_v31, 1  ;;  %v712_v35 = vadd.f32 %v711_v32, %v710_v28 }
 0x1b4   : > { %v926_v36 = vpop.eup %925 }
 0x1b5   : > { %v723_v37 = vmul.f32 %v926_v36, %v1049_v44  ;;  %935 = vrcp.f32 %v702_v33  ;;  %v708_v38 = vadd.f32 %v707_v34, %v706_v31  ;;  %v713_v39 = vrot.slane %v712_v35, 1 }
 0x1b6   : > { %v928_v40 = vpop.eup %927 }
 0x1b7   : > { %732 = vst.msk [vmem:[%s216_s23] sm:$0xff] %vm731_vm2, %v723_v37  ;;  %v725_v41 = vmul.f32 %v928_v40, %v1052_v48  ;;  %937 = vrcp.f32 %v708_v38  ;;  %v714_v42 = vadd.f32 %v713_v39, %v712_v35 }
 0x1b8   : > { %v930_v43 = vpop.eup %929 }
 0x1b9   : > { %734 = vst.msk [vmem:[%s216_s23 + $0x10] sm:$0xff] %vm731_vm2, %v725_v41  ;;  %v724_v45 = vmul.f32 %v930_v43, %v1056_v52  ;;  %939 = vrcp.f32 %v714_v42 }
 0x1ba   : > { %v932_v46 = vpop.eup %931 }
 0x1bb   : > { %733 = vst.msk [vmem:[%s216_s23 + $0x8] sm:$0xff] %vm731_vm2, %v724_v45  ;;  %v726_v44 = vmul.f32 %v932_v46, %v1060_v56 }
 0x1bd   : > { %v934_v47 = vpop.eup %933  ;;  %735 = vst.msk [vmem:[%s216_s23 + $0x18] sm:$0xff] %vm731_vm2, %v726_v44 }
 0x1be   : > { %v727_v49 = vmul.f32 %v934_v47, %v1064_v61 }
 0x1bf   : > { %v936_v50 = vpop.eup %935 }
 0x1c0   : > { %736 = vst.msk [vmem:[%s216_s23 + $0x20] sm:$0xff] %vm731_vm2, %v727_v49  ;;  %v728_v48 = vmul.f32 %v936_v50, %v920_v3 }
 0x1c1   : > { %v938_v51 = vpop.eup %937 }
 0x1c2   : > { %737 = vst.msk [vmem:[%s216_s23 + $0x28] sm:$0xff] %vm731_vm2, %v728_v48  ;;  %v729_v53 = vmul.f32 %v938_v51, %v922_v10 }
 0x1c3   : > { %v940_v52 = vpop.eup %939 }
 0x1c4   : > { %738 = vst.msk [vmem:[%s216_s23 + $0x30] sm:$0xff] %vm731_vm2, %v729_v53  ;;  %v730_v54 = vmul.f32 %v940_v52, %v924_v17 }
 0x1c6   : > { %739 = vst.msk [vmem:[%s216_s23 + $0x38] sm:$0xff] %vm731_vm2, %v730_v54 }
 0x1c7 PF: > { %s14_s15 = sadd.s32 1, %s947_s15  }
 0x1c8   : > { %p11_p5 = scmp.ge.s32.totalorder %s14_s15, 4  }
 0x1ca   :  { %13 = sbr.rel (!%p11_p5) target bundleno = 1 (0x1), region = 70 }

</bundles_post_ra>
